<compile_context>
chip_gen: v7x
topology: tpu7x:2x2x1
jax: 0.10.0
libtpu: 0.0.40
codegen_flags: <defaults>
</compile_context>

<pallas_src>
from functools import partial

import numpy as np
import jax
import jax.numpy as jnp
from jax.experimental import pallas as pl
from jax.experimental.pallas import tpu as pltpu

D_MODEL = 32
MASK_HEAD_HIDDEN_LAYERS = 3          # 3x (Linear, ReLU) + final Linear = 4 Linear layers
N_LAYERS = MASK_HEAD_HIDDEN_LAYERS + 1
TILE_NF = 512                        # feature-row tile (multiple of 8) for large images


# ---------------- fused Pallas kernel: mask_embed MLP + feats @ emb_queries.T ----------------
def _fused_kernel(q_ref, f_ref, w_ref, b_ref, o_ref):
    # q_ref: [1, nq_pad, d]   per-image query slab (zero-padded rows)
    # f_ref: [1, tile_nf, d]  per-image feature-row tile (zero-padded rows)
    # w_ref: [4, d, d]        Linear weights, already transposed to [in, out]
    # b_ref: [4, d]           packed biases
    # o_ref: [1, tile_nf, nq_pad]
    x = q_ref[0]                                  # [nq_pad, d] f32
    ws = w_ref[...]                               # [4, d, d]
    bs = b_ref[...]                               # [4, d]
    for i in range(N_LAYERS - 1):                 # hidden Linear + ReLU layers
        x = jnp.maximum(
            jnp.dot(x, ws[i], preferred_element_type=jnp.float32) + bs[i:i + 1, :], 0.0)
    x = (jnp.dot(x, ws[N_LAYERS - 1], preferred_element_type=jnp.float32)
         + bs[N_LAYERS - 1:N_LAYERS, :])          # final Linear (no ReLU)

    # logits = feats @ emb_queries.T via dot_general contracting the last dim of BOTH
    # operands -> no transposed copy of x is materialized.
    f = f_ref[0]                                  # [tile_nf, d]
    o_ref[0] = jax.lax.dot_general(
        f, x, (((1,), (1,)), ((), ())),
        preferred_element_type=jnp.float32).astype(o_ref.dtype)
    # TODO(synk): on v6e/v7x, feeding f/x in bf16 (f32 accumulate) halves DMA bytes once
    # downstream tolerance allows; kept f32 here to match the torch float32 module exactly.


def fused_segmentation_logits(f_pad, q_pad, w_stack, b_stack):
    B, nf_pad, d = f_pad.shape
    _, nq_pad, _ = q_pad.shape
    tile_nf = nf_pad if nf_pad <= TILE_NF else TILE_NF
    assert nf_pad % tile_nf == 0
    n_tiles = nf_pad // tile_nf
    return pl.pallas_call(
        _fused_kernel,
        out_shape=jax.ShapeDtypeStruct((B, nf_pad, nq_pad), jnp.float32),
        grid=(B, n_tiles),
        in_specs=[
            pl.BlockSpec((1, nq_pad, d), lambda b, t: (b, 0, 0)),       # query slab (per image)
            pl.BlockSpec((1, tile_nf, d), lambda b, t: (b, t, 0)),      # feature-row tile
            pl.BlockSpec((N_LAYERS, d, d), lambda b, t: (0, 0, 0)),     # weights, resident
            pl.BlockSpec((N_LAYERS, d), lambda b, t: (0, 0)),           # biases, resident
        ],
        out_specs=pl.BlockSpec((1, tile_nf, nq_pad), lambda b, t: (b, t, 0)),
        compiler_params=pltpu.CompilerParams(
            dimension_semantics=("parallel", "parallel")),
    )(q_pad, f_pad, w_stack, b_stack)


# ---------------- jitted device pipeline: pad ragged slabs -> kernel -> valid values ----------------
@partial(jax.jit, static_argnames=("nf", "nq", "nf_pad", "nq_pad"))
def _device_forward(queries, feature_values, w_stack, b_stack, nf, nq, nf_pad, nq_pad):
    B = len(nf)
    q_offs = np.concatenate([[0], np.cumsum(nq)])
    f_offs = np.concatenate([[0], np.cumsum(nf)])
    q_pad = jnp.stack([
        jnp.pad(queries[q_offs[b]:q_offs[b + 1]], ((0, nq_pad - nq[b]), (0, 0)))
        for b in range(B)])                                          # [B, nq_pad, d]
    f_pad = jnp.stack([
        jnp.pad(feature_values[f_offs[b]:f_offs[b + 1]], ((0, nf_pad - nf[b]), (0, 0)))
        for b in range(B)])                                          # [B, nf_pad, d]
    logits = fused_segmentation_logits(f_pad, q_pad, w_stack, b_stack)
    # flatten the valid (nf_b, nq_b) region of each image row-major, matching torch .flatten()
    return jnp.concatenate([logits[b, :nf[b], :nq[b]].reshape(-1) for b in range(B)])


# ---------------- wrapper: sparse COO assembly (host metadata only) ----------------
def segmentation_map_predictor(feature_indices, feature_values, feature_offsets,
                               queries, query_batch_offsets, params, spatial_shape):
    """Returns (coo_indices [4, nnz], coo_values [nnz], dense_shape) mimicking the
    torch.sparse_coo_tensor(...).coalesce() output of the PyTorch module."""
    B = len(feature_offsets) - 1
    nf = tuple(int(feature_offsets[b + 1] - feature_offsets[b]) for b in range(B))
    nq = tuple(int(query_batch_offsets[b + 1] - query_batch_offsets[b]) for b in range(B))

    # feature rows padded to a sublane multiple (and to the tile size when large);
    # query axis (output lane axis) padded to a multiple of 128 for unmasked stores.
    nf_pad = -(-max(nf) // 8) * 8
    if nf_pad > TILE_NF:
        nf_pad = -(-nf_pad // TILE_NF) * TILE_NF
    nq_pad = max(128, -(-max(nq) // 128) * 128)

    # pre-transpose Linear weights to [in, out] (no in-kernel transposes) and pack biases
    w_stack = jnp.stack([w.T for w, _ in params])                    # [4, d, d]
    b_stack = jnp.stack([b for _, b in params])                      # [4, d]

    vals = _device_forward(jnp.asarray(queries, jnp.float32),
                           jnp.asarray(feature_values, jnp.float32),
                           w_stack, b_stack, nf, nq, nf_pad, nq_pad)
    vals = np.asarray(jax.block_until_ready(vals))                   # single final D2H transfer

    # COO index bookkeeping on host metadata (batch, h, w, query), then "coalesce" by sort.
    fi_np = np.asarray(feature_indices)
    f_offs = np.concatenate([[0], np.cumsum(nf)])
    all_idx = []
    for b in range(B):
        fi_b = fi_np[f_offs[b]:f_offs[b + 1]]                        # [nf_b, 3]
        qi = np.arange(nq[b])
        idx = np.concatenate(
            [np.broadcast_to(fi_b[:, None, :], (nf[b], nq[b], 3)),
             np.broadcast_to(qi[None, :, None], (nf[b], nq[b], 1))], axis=-1)
        all_idx.append(idx.reshape(-1, 4))
    idx = np.concatenate(all_idx, 0).T                               # [4, nnz]
    # TODO(synk): torch .coalesce() also sums duplicate indices; (b,h,w,q) tuples are
    # unique for this module's inputs, so a lexicographic sort reproduces it exactly.
    order = np.lexsort(idx[::-1])
    dense_shape = (B, spatial_shape[0], spatial_shape[1], max(nq))
    return idx[:, order], vals[order], dense_shape


# ---------------------------------- main ----------------------------------
if __name__ == "__main__":
    key = jax.random.PRNGKey(0)
    keys = jax.random.split(key, 12)
    d = D_MODEL
    B, H, W = 2, 16, 16
    nq = [5, 3]            # queries per image
    nf = [20, 12]          # nonzero feature-map pixels per image
    query_batch_offsets = np.array([0, nq[0], nq[0] + nq[1]])
    feature_offsets = np.array([0, nf[0], nf[0] + nf[1]])

    # deterministic parameters (torch Linear default-ish uniform init), W is [out, in]
    bound = 1.0 / np.sqrt(d)
    params = []
    for li in range(N_LAYERS):
        wk, bk = jax.random.split(keys[li])
        w = jax.random.uniform(wk, (d, d), jnp.float32, -bound, bound)
        b = jax.random.uniform(bk, (d,), jnp.float32, -bound, bound)
        params.append((w, b))

    # deterministic inputs
    queries = jax.random.normal(keys[8], (sum(nq), d), jnp.float32)
    feature_values = jax.random.normal(keys[9], (sum(nf), d), jnp.float32)
    fi = []
    for b in range(B):
        pos = np.asarray(jax.random.choice(keys[10 + b], H * W, (nf[b],), replace=False))
        fi.append(np.stack([np.full(nf[b], b), pos // W, pos % W], axis=-1))
    feature_indices = np.concatenate(fi, 0)                          # [Nf_total, 3]

    coo_idx, coo_val, dense_shape = segmentation_map_predictor(
        feature_indices, feature_values, feature_offsets,
        queries, query_batch_offsets, params, (H, W))

    # ----- pure-numpy reference check -----
    def ref_mlp(x):
        x = np.asarray(x, np.float32)
        for i, (w, bsl) in enumerate(params):
            x = x @ np.asarray(w).T + np.asarray(bsl)
            if i < len(params) - 1:
                x = np.maximum(x, 0.0)
        return x

    emb_ref = ref_mlp(queries)
    ref_idx, ref_val = [], []
    fv_np = np.asarray(feature_values, np.float32)
    for b in range(B):
        fb = fv_np[feature_offsets[b]:feature_offsets[b + 1]]
        qb = emb_ref[query_batch_offsets[b]:query_batch_offsets[b + 1]]
        lg = fb @ qb.T
        fi_b = feature_indices[feature_offsets[b]:feature_offsets[b + 1]]
        for i in range(nf[b]):
            for q in range(nq[b]):
                ref_idx.append((b, fi_b[i, 1], fi_b[i, 2], q))
                ref_val.append(lg[i, q])
    ref_idx = np.array(ref_idx).T
    ref_val = np.array(ref_val, np.float32)
    order = np.lexsort(ref_idx[::-1])
    ref_idx, ref_val = ref_idx[:, order], ref_val[order]

    assert coo_idx.shape == ref_idx.shape and np.array_equal(coo_idx, ref_idx)
    np.testing.assert_allclose(coo_val, ref_val, rtol=1e-4, atol=1e-5)
    assert dense_shape == (B, H, W, max(nq))
    print("KERNEL_OK")
</pallas_src>

<mosaic_0001>
module attributes {stable_mosaic.version = 11 : i64} {
  func.func @_fused_kernel(%arg0: i32, %arg1: i32, %arg2: memref<1x128x32xf32, #tpu.memory_space<vmem>>, %arg3: memref<1x24x32xf32, #tpu.memory_space<vmem>>, %arg4: memref<4x32x32xf32, #tpu.memory_space<vmem>>, %arg5: memref<4x32xf32, #tpu.memory_space<vmem>>, %arg6: memref<1x24x128xf32, #tpu.memory_space<vmem>>) attributes {dimension_semantics = [#tpu.dimension_semantics<parallel>, #tpu.dimension_semantics<parallel>], iteration_bounds = array<i64: 2, 1>, scalar_prefetch = 0 : i64, scratch_operands = 0 : i64, tpu.core_type = #tpu.core_type<tc>, window_params = [{transform_indices = @transform_0, window_bounds = array<i64: 1, 128, 32>}, {transform_indices = @transform_1, window_bounds = array<i64: 1, 24, 32>}, {pipeline_mode = #tpu.pipeline_mode<synchronous>, transform_indices = @transform_2, window_bounds = array<i64: 4, 32, 32>}, {pipeline_mode = #tpu.pipeline_mode<synchronous>, transform_indices = @transform_3, window_bounds = array<i64: 4, 32>}, {transform_indices = @transform_4, window_bounds = array<i64: 1, 24, 128>}]} {
    %c0 = arith.constant 0 : index
    %c0_0 = arith.constant 0 : index
    %c0_1 = arith.constant 0 : index
    %0 = vector.load %arg2[%c0, %c0_0, %c0_1] : memref<1x128x32xf32, #tpu.memory_space<vmem>>, vector<1x128x32xf32>
    %1 = vector.shape_cast %0 : vector<1x128x32xf32> to vector<128x32xf32>
    %c0_2 = arith.constant 0 : index
    %c0_3 = arith.constant 0 : index
    %c0_4 = arith.constant 0 : index
    %2 = vector.load %arg4[%c0_2, %c0_3, %c0_4] : memref<4x32x32xf32, #tpu.memory_space<vmem>>, vector<4x32x32xf32>
    %c0_5 = arith.constant 0 : index
    %c0_6 = arith.constant 0 : index
    %3 = vector.load %arg5[%c0_5, %c0_6] : memref<4x32xf32, #tpu.memory_space<vmem>>, vector<4x32xf32>
    %4 = vector.extract_strided_slice %2 {offsets = [0, 0, 0], sizes = [1, 32, 32], strides = [1, 1, 1]} : vector<4x32x32xf32> to vector<1x32x32xf32>
    %5 = vector.shape_cast %4 : vector<1x32x32xf32> to vector<32x32xf32>
    %cst = arith.constant dense<0.000000e+00> : vector<128x32xf32>
    %6 = tpu.matmul %1, %5, %cst {dimension_numbers = #tpu.dot_dimension_numbers<[1], [0], [0], [1], [0, 0, 1, 1], [], []>} : vector<128x32xf32>, vector<32x32xf32>, vector<128x32xf32> -> vector<128x32xf32>
    %7 = vector.extract_strided_slice %3 {offsets = [0, 0], sizes = [1, 32], strides = [1, 1]} : vector<4x32xf32> to vector<1x32xf32>
    %8 = vector.broadcast %7 : vector<1x32xf32> to vector<128x32xf32>
    %9 = arith.addf %6, %8 : vector<128x32xf32>
    %cst_7 = arith.constant 0.000000e+00 : f32
    %10 = vector.broadcast %cst_7 : f32 to vector<128x32xf32>
    %11 = arith.maximumf %9, %10 : vector<128x32xf32>
    %12 = vector.extract_strided_slice %2 {offsets = [1, 0, 0], sizes = [1, 32, 32], strides = [1, 1, 1]} : vector<4x32x32xf32> to vector<1x32x32xf32>
    %13 = vector.shape_cast %12 : vector<1x32x32xf32> to vector<32x32xf32>
    %cst_8 = arith.constant dense<0.000000e+00> : vector<128x32xf32>
    %14 = tpu.matmul %11, %13, %cst_8 {dimension_numbers = #tpu.dot_dimension_numbers<[1], [0], [0], [1], [0, 0, 1, 1], [], []>} : vector<128x32xf32>, vector<32x32xf32>, vector<128x32xf32> -> vector<128x32xf32>
    %15 = vector.extract_strided_slice %3 {offsets = [1, 0], sizes = [1, 32], strides = [1, 1]} : vector<4x32xf32> to vector<1x32xf32>
    %16 = vector.broadcast %15 : vector<1x32xf32> to vector<128x32xf32>
    %17 = arith.addf %14, %16 : vector<128x32xf32>
    %cst_9 = arith.constant 0.000000e+00 : f32
    %18 = vector.broadcast %cst_9 : f32 to vector<128x32xf32>
    %19 = arith.maximumf %17, %18 : vector<128x32xf32>
    %20 = vector.extract_strided_slice %2 {offsets = [2, 0, 0], sizes = [1, 32, 32], strides = [1, 1, 1]} : vector<4x32x32xf32> to vector<1x32x32xf32>
    %21 = vector.shape_cast %20 : vector<1x32x32xf32> to vector<32x32xf32>
    %cst_10 = arith.constant dense<0.000000e+00> : vector<128x32xf32>
    %22 = tpu.matmul %19, %21, %cst_10 {dimension_numbers = #tpu.dot_dimension_numbers<[1], [0], [0], [1], [0, 0, 1, 1], [], []>} : vector<128x32xf32>, vector<32x32xf32>, vector<128x32xf32> -> vector<128x32xf32>
    %23 = vector.extract_strided_slice %3 {offsets = [2, 0], sizes = [1, 32], strides = [1, 1]} : vector<4x32xf32> to vector<1x32xf32>
    %24 = vector.broadcast %23 : vector<1x32xf32> to vector<128x32xf32>
    %25 = arith.addf %22, %24 : vector<128x32xf32>
    %cst_11 = arith.constant 0.000000e+00 : f32
    %26 = vector.broadcast %cst_11 : f32 to vector<128x32xf32>
    %27 = arith.maximumf %25, %26 : vector<128x32xf32>
    %28 = vector.extract_strided_slice %2 {offsets = [3, 0, 0], sizes = [1, 32, 32], strides = [1, 1, 1]} : vector<4x32x32xf32> to vector<1x32x32xf32>
    %29 = vector.shape_cast %28 : vector<1x32x32xf32> to vector<32x32xf32>
    %cst_12 = arith.constant dense<0.000000e+00> : vector<128x32xf32>
    %30 = tpu.matmul %27, %29, %cst_12 {dimension_numbers = #tpu.dot_dimension_numbers<[1], [0], [0], [1], [0, 0, 1, 1], [], []>} : vector<128x32xf32>, vector<32x32xf32>, vector<128x32xf32> -> vector<128x32xf32>
    %31 = vector.extract_strided_slice %3 {offsets = [3, 0], sizes = [1, 32], strides = [1, 1]} : vector<4x32xf32> to vector<1x32xf32>
    %32 = vector.broadcast %31 : vector<1x32xf32> to vector<128x32xf32>
    %33 = arith.addf %30, %32 : vector<128x32xf32>
    %c0_13 = arith.constant 0 : index
    %c0_14 = arith.constant 0 : index
    %c0_15 = arith.constant 0 : index
    %34 = vector.load %arg3[%c0_13, %c0_14, %c0_15] : memref<1x24x32xf32, #tpu.memory_space<vmem>>, vector<1x24x32xf32>
    %35 = vector.shape_cast %34 : vector<1x24x32xf32> to vector<24x32xf32>
    %cst_16 = arith.constant dense<0.000000e+00> : vector<24x128xf32>
    %36 = tpu.matmul %35, %33, %cst_16 {dimension_numbers = #tpu.dot_dimension_numbers<[1], [1], [0], [0], [0, 0, 1, 0], [], []>} : vector<24x32xf32>, vector<128x32xf32>, vector<24x128xf32> -> vector<24x128xf32>
    %c0_17 = arith.constant 0 : index
    %c0_18 = arith.constant 0 : index
    %c0_19 = arith.constant 0 : index
    %37 = vector.load %arg6[%c0_17, %c0_18, %c0_19] : memref<1x24x128xf32, #tpu.memory_space<vmem>>, vector<1x24x128xf32>
    %38 = vector.shape_cast %37 : vector<1x24x128xf32> to vector<24x128xf32>
    %39 = vector.shape_cast %36 : vector<24x128xf32> to vector<1x24x128xf32>
    tpu.vector_store %arg6[%c0_17, %c0_18, %c0_19], %39 {strides = array<i32>} : memref<1x24x128xf32, #tpu.memory_space<vmem>>, vector<1x24x128xf32>,
    return
  }
  func.func @transform_0(%arg0: i32, %arg1: i32) -> (i32, i32, i32) {
    %c0_i32 = arith.constant 0 : i32
    %c0_i32_0 = arith.constant 0 : i32
    %c0_i32_1 = arith.constant 0 : i32
    return %arg0, %c0_i32, %c0_i32_0 : i32, i32, i32
  }
  func.func @transform_1(%arg0: i32, %arg1: i32) -> (i32, i32, i32) {
    %c0_i32 = arith.constant 0 : i32
    %c0_i32_0 = arith.constant 0 : i32
    return %arg0, %arg1, %c0_i32 : i32, i32, i32
  }
  func.func @transform_2(%arg0: i32, %arg1: i32) -> (i32, i32, i32) {
    %c0_i32 = arith.constant 0 : i32
    %c0_i32_0 = arith.constant 0 : i32
    %c0_i32_1 = arith.constant 0 : i32
    %c0_i32_2 = arith.constant 0 : i32
    return %c0_i32, %c0_i32_0, %c0_i32_1 : i32, i32, i32
  }
  func.func @transform_3(%arg0: i32, %arg1: i32) -> (i32, i32) {
    %c0_i32 = arith.constant 0 : i32
    %c0_i32_0 = arith.constant 0 : i32
    %c0_i32_1 = arith.constant 0 : i32
    return %c0_i32, %c0_i32_0 : i32, i32
  }
  func.func @transform_4(%arg0: i32, %arg1: i32) -> (i32, i32, i32) {
    %c0_i32 = arith.constant 0 : i32
    %c0_i32_0 = arith.constant 0 : i32
    return %arg0, %arg1, %c0_i32 : i32, i32, i32
  }
}

</mosaic_0001>

<bundles_post_ra>
// kernel: squeeze.2
= control target key start
LH: loop header
LB: loop body
LE: loop exit
PB: predicated region body
PF: predicated region fallthrough
CT: control target
= control target key end

     0   :  { %s163_s10 = smov 95   ;;  %s164_s11 = smov 85   ;;  %vm3_vm0 = vcmask 39936   ;;  %vm9_vm1 = vcmask 818936   ;;  %vm15_vm2 = vcmask 777936   ;;  %vm21_vm3 = vcmask 736936   ;;  %s255_s0 = inlined_call_operand.vmem [shape: f32[1,20,5], index: 0, kind: input, shape index: {}]   ;;  %s256_s1 = inlined_call_operand.vmem [shape: f32[100], index: 1, kind: output, shape index: {}]  }
   0x1   :  { %v125_v0 = vld [vmem:[%s255_s0 + $0x13] sm:$0x1]   ;;  %v127_v1 = vld [vmem:[%s255_s0 + $0x11] sm:$0x1]   ;;  %v126_v2 = vld [vmem:[%s255_s0 + $0x12] sm:$0x1]  }
   0x2   :  { %7 = vrot.lane.b32.xlu0 %v125_v0, %s163_s10  ;;  %19 = vrot.lane.b32.xlu1 %v127_v1, %s164_s11  ;;  %v128_v3 = vld [vmem:[%s255_s0 + $0x10] sm:$0x1]   ;;  %s165_s16 = smov 90   ;;  %s166_s17 = smov 80   ;;  %v129_v4 = vld [vmem:[%s255_s0 + $0xf] sm:$0x1]  }
   0x3   :  { %v130_v5 = vld [vmem:[%s255_s0 + $0xe] sm:$0x1]   ;;  %s167_s22 = smov 75   ;;  %s168_s23 = smov 70   ;;  %v131_v6 = vld [vmem:[%s255_s0 + $0xd] sm:$0x1]  }
   0x4   :  { %v2_v7 = vld [vmem:[%s255_s0] sm:$0x1]   ;;  %v132_v8 = vld [vmem:[%s255_s0 + $0xc] sm:$0x1]   ;;  %s169_s30 = smov 65   ;;  %s170_s2 = smov 60  }
   0x5   :  { %4 = vst.msk [vmem:[#allocation0] sm:$0x1] %vm3_vm0, %v2_v7   ;;  %v133_v9 = vld [vmem:[%s255_s0 + $0xb] sm:$0x1]   ;;  %v134_v10 = vld [vmem:[%s255_s0 + $0xa] sm:$0x1]  }
   0x6   :  { %13 = vrot.lane.b32.xlu0 %v126_v2, %s165_s16  ;;  %25 = vrot.lane.b32.xlu1 %v128_v3, %s166_s17  ;;  %s171_s7 = smov 55   ;;  %s172_s8 = smov 50   ;;  %v135_v11 = vld [vmem:[%s255_s0 + $0x9] sm:$0x1]   ;;  %v136_v12 = vld [vmem:[%s255_s0 + $0x8] sm:$0x1]  }
   0x7   :  { %s173_s13 = smov 45   ;;  %s174_s14 = smov 40   ;;  %v137_v13 = vld [vmem:[%s255_s0 + $0x7] sm:$0x1]   ;;  %v138_v14 = vld [vmem:[%s255_s0 + $0x6] sm:$0x1]  }
   0x8   :  { %s175_s19 = smov 35   ;;  %s176_s20 = smov 30   ;;  %v139_v15 = vld [vmem:[%s255_s0 + $0x5] sm:$0x1]   ;;  %v140_v16 = vld [vmem:[%s255_s0 + $0x4] sm:$0x1]  }
   0x9   :  { %s177_s25 = smov 25   ;;  %s178_s26 = smov 20   ;;  %v141_v17 = vld [vmem:[%s255_s0 + $0x3] sm:$0x1]   ;;  %v142_v18 = vld [vmem:[%s255_s0 + $0x2] sm:$0x1]  }
   0xa   :  { %31 = vrot.lane.b32.xlu0 %v129_v4, %s167_s22  ;;  %37 = vrot.lane.b32.xlu1 %v130_v5, %s168_s23  ;;  %s180_s3 = smov 10   ;;  %v143_v19 = vld [vmem:[%s255_s0 + $0x1] sm:$0x1]   ;;  %s181_s0 = smov 5   ;;  %vm27_vm4 = vcmask 695936   ;;  %vm33_vm5 = vcmask 654936  }
   0xb   :  { %vm39_vm6 = vcmask 613936   ;;  %vm45_vm7 = vcmask 572936   ;;  %vm51_vm8 = vcmask 531936   ;;  %vm57_vm9 = vcmask 490936  }
   0xc   :  { %vm63_vm10 = vcmask 449936   ;;  %vm69_vm11 = vcmask 408936   ;;  %vm75_vm12 = vcmask 367936   ;;  %vm81_vm13 = vcmask 326936  }
   0xd   :  { %vm87_vm14 = vcmask 285936   ;;  %vm93_vm15 = vcmask 244936   ;;  %vm99_vm0 = vcmask 203936  }
   0xe   :  { %43 = vrot.lane.b32.xlu0 %v131_v6, %s169_s30  ;;  %49 = vrot.lane.b32.xlu1 %v132_v8, %s170_s2  ;;  %s179_s2 = smov 15  }
  0x12   :  { %55 = vrot.lane.b32.xlu0 %v133_v9, %s171_s7  ;;  %61 = vrot.lane.b32.xlu1 %v134_v10, %s172_s8 }
  0x16   :  { %67 = vrot.lane.b32.xlu0 %v135_v11, %s173_s13  ;;  %73 = vrot.lane.b32.xlu1 %v136_v12, %s174_s14 }
  0x1a   :  { %79 = vrot.lane.b32.xlu0 %v137_v13, %s175_s19  ;;  %85 = vrot.lane.b32.xlu1 %v138_v14, %s176_s20 }
  0x1e   :  { %91 = vrot.lane.b32.xlu0 %v139_v15, %s177_s25  ;;  %97 = vrot.lane.b32.xlu1 %v140_v16, %s178_s26 }
  0x22   :  { %103 = vrot.lane.b32.xlu0 %v141_v17, %s179_s2  ;;  %109 = vrot.lane.b32.xlu1 %v142_v18, %s180_s3 }
  0x26   :  { %115 = vrot.lane.b32.xlu0 %v143_v19, %s181_s0 }
  0x74   :  { %v8_v20 = vpop.permute.xlu0 %7   ;;  %v20_v21 = vpop.permute.xlu1 %19  }
  0x75   :  { %10 = vst.msk [vmem:[#allocation0] sm:$0x1] %vm9_vm1, %v8_v20   ;;  %vm105_vm1 = vcmask 162936  }
  0x78   :  { %v14_v22 = vpop.permute.xlu0 %13   ;;  %v26_v23 = vpop.permute.xlu1 %25  }
  0x79   :  { %16 = vst.msk [vmem:[#allocation0] sm:$0x1] %vm15_vm2, %v14_v22   ;;  %vm111_vm2 = vcmask 121936  }
  0x7a   :  { %22 = vst.msk [vmem:[#allocation0] sm:$0x1] %vm21_vm3, %v20_v21   ;;  %vm117_vm3 = vcmask 80936  }
  0x7b   :  { %28 = vst.msk [vmem:[#allocation0] sm:$0x1] %vm27_vm4, %v26_v23  }
  0x7c   :  { %v32_v24 = vpop.permute.xlu0 %31   ;;  %v38_v25 = vpop.permute.xlu1 %37  }
  0x7d   :  { %34 = vst.msk [vmem:[#allocation0] sm:$0x1] %vm33_vm5, %v32_v24  }
  0x7e   :  { %40 = vst.msk [vmem:[#allocation0] sm:$0x1] %vm39_vm6, %v38_v25  }
  0x80   :  { %v44_v26 = vpop.permute.xlu0 %43   ;;  %v50_v27 = vpop.permute.xlu1 %49  }
  0x81   :  { %46 = vst.msk [vmem:[#allocation0] sm:$0x1] %vm45_vm7, %v44_v26  }
  0x82   :  { %52 = vst.msk [vmem:[#allocation0] sm:$0x1] %vm51_vm8, %v50_v27  }
  0x84   :  { %v56_v28 = vpop.permute.xlu0 %55   ;;  %v62_v29 = vpop.permute.xlu1 %61  }
  0x85   :  { %58 = vst.msk [vmem:[#allocation0] sm:$0x1] %vm57_vm9, %v56_v28  }
  0x86   :  { %64 = vst.msk [vmem:[#allocation0] sm:$0x1] %vm63_vm10, %v62_v29  }
  0x88   :  { %v68_v30 = vpop.permute.xlu0 %67   ;;  %v74_v31 = vpop.permute.xlu1 %73  }
  0x89   :  { %70 = vst.msk [vmem:[#allocation0] sm:$0x1] %vm69_vm11, %v68_v30  }
  0x8a   :  { %76 = vst.msk [vmem:[#allocation0] sm:$0x1] %vm75_vm12, %v74_v31  }
  0x8c   :  { %v80_v32 = vpop.permute.xlu0 %79   ;;  %v86_v33 = vpop.permute.xlu1 %85  }
  0x8d   :  { %82 = vst.msk [vmem:[#allocation0] sm:$0x1] %vm81_vm13, %v80_v32  }
  0x8e   :  { %88 = vst.msk [vmem:[#allocation0] sm:$0x1] %vm87_vm14, %v86_v33  }
  0x90   :  { %v92_v34 = vpop.permute.xlu0 %91   ;;  %v98_v35 = vpop.permute.xlu1 %97  }
  0x91   :  { %94 = vst.msk [vmem:[#allocation0] sm:$0x1] %vm93_vm15, %v92_v34  }
  0x92   :  { %100 = vst.msk [vmem:[#allocation0] sm:$0x1] %vm99_vm0, %v98_v35  }
  0x94   :  { %v104_v36 = vpop.permute.xlu0 %103   ;;  %v110_v37 = vpop.permute.xlu1 %109  }
  0x95   :  { %106 = vst.msk [vmem:[#allocation0] sm:$0x1] %vm105_vm1, %v104_v36  }
  0x96   :  { %112 = vst.msk [vmem:[#allocation0] sm:$0x1] %vm111_vm2, %v110_v37  }
  0x98   :  { %v116_v38 = vpop.permute.xlu0 %115  }
  0x99   :  { %118 = vst.msk [vmem:[#allocation0] sm:$0x1] %vm117_vm3, %v116_v38  }
  0xa0   :  { %v122_v39 = vld [vmem:[#allocation0] sm:$0x1] }
  0xa1   :  { %124 = vst [vmem:[%s256_s1] sm:$0x1] %v122_v39 }

// kernel: squeeze.3
= control target key start
LH: loop header
LB: loop body
LE: loop exit
PB: predicated region body
PF: predicated region fallthrough
CT: control target
= control target key end

     0   :  { %s99_s10 = smov 33   ;;  %s100_s11 = smov 27   ;;  %vm3_vm0 = vcmask 23552   ;;  %vm9_vm1 = vcmask 294152   ;;  %vm15_vm2 = vcmask 269552   ;;  %vm21_vm3 = vcmask 244952   ;;  %s159_s0 = inlined_call_operand.vmem [shape: f32[1,12,3], index: 0, kind: input, shape index: {}]   ;;  %s160_s1 = inlined_call_operand.vmem [shape: f32[36], index: 1, kind: output, shape index: {}]  }
   0x1   :  { %v77_v0 = vld [vmem:[%s159_s0 + $0xb] sm:$0x1]   ;;  %v79_v1 = vld [vmem:[%s159_s0 + $0x9] sm:$0x1]   ;;  %v78_v2 = vld [vmem:[%s159_s0 + $0xa] sm:$0x1]  }
   0x2   :  { %7 = vrot.lane.b32.xlu0 %v77_v0, %s99_s10  ;;  %19 = vrot.lane.b32.xlu1 %v79_v1, %s100_s11  ;;  %v80_v3 = vld [vmem:[%s159_s0 + $0x8] sm:$0x1]   ;;  %s101_s16 = smov 30   ;;  %s102_s17 = smov 24   ;;  %v81_v4 = vld [vmem:[%s159_s0 + $0x7] sm:$0x1]  }
   0x3   :  { %v2_v5 = vld [vmem:[%s159_s0] sm:$0x1]   ;;  %v82_v6 = vld [vmem:[%s159_s0 + $0x6] sm:$0x1]   ;;  %s103_s24 = smov 21   ;;  %s104_s25 = smov 18  }
   0x4   :  { %4 = vst.msk [vmem:[#allocation0] sm:$0x1] %vm3_vm0, %v2_v5   ;;  %v83_v7 = vld [vmem:[%s159_s0 + $0x5] sm:$0x1]   ;;  %v84_v8 = vld [vmem:[%s159_s0 + $0x4] sm:$0x1]  }
   0x5   :  { %s105_s30 = smov 15   ;;  %s106_s2 = smov 12   ;;  %v85_v9 = vld [vmem:[%s159_s0 + $0x3] sm:$0x1]   ;;  %v86_v10 = vld [vmem:[%s159_s0 + $0x2] sm:$0x1]  }
   0x6   :  { %13 = vrot.lane.b32.xlu0 %v78_v2, %s101_s16  ;;  %25 = vrot.lane.b32.xlu1 %v80_v3, %s102_s17  ;;  %s107_s7 = smov 9   ;;  %s108_s8 = smov 6   ;;  %v87_v11 = vld [vmem:[%s159_s0 + $0x1] sm:$0x1]   ;;  %vm27_vm4 = vcmask 220352   ;;  %vm33_vm5 = vcmask 195752  }
   0x7   :  { %s109_s0 = smov 3   ;;  %vm39_vm6 = vcmask 171152   ;;  %vm45_vm7 = vcmask 146552   ;;  %vm51_vm8 = vcmask 121952   ;;  %vm57_vm9 = vcmask 97352  }
   0x8   :  { %vm63_vm10 = vcmask 72752   ;;  %vm69_vm11 = vcmask 48152  }
   0xa   :  { %31 = vrot.lane.b32.xlu0 %v81_v4, %s103_s24  ;;  %37 = vrot.lane.b32.xlu1 %v82_v6, %s104_s25 }
   0xe   :  { %43 = vrot.lane.b32.xlu0 %v83_v7, %s105_s30  ;;  %49 = vrot.lane.b32.xlu1 %v84_v8, %s106_s2 }
  0x12   :  { %55 = vrot.lane.b32.xlu0 %v85_v9, %s107_s7  ;;  %61 = vrot.lane.b32.xlu1 %v86_v10, %s108_s8 }
  0x16   :  { %67 = vrot.lane.b32.xlu0 %v87_v11, %s109_s0 }
  0x74   :  { %v8_v12 = vpop.permute.xlu0 %7   ;;  %v20_v13 = vpop.permute.xlu1 %19  }
  0x75   :  { %10 = vst.msk [vmem:[#allocation0] sm:$0x1] %vm9_vm1, %v8_v12  }
  0x78   :  { %v14_v14 = vpop.permute.xlu0 %13   ;;  %v26_v15 = vpop.permute.xlu1 %25  }
  0x79   :  { %16 = vst.msk [vmem:[#allocation0] sm:$0x1] %vm15_vm2, %v14_v14  }
  0x7a   :  { %22 = vst.msk [vmem:[#allocation0] sm:$0x1] %vm21_vm3, %v20_v13  }
  0x7b   :  { %28 = vst.msk [vmem:[#allocation0] sm:$0x1] %vm27_vm4, %v26_v15  }
  0x7c   :  { %v32_v16 = vpop.permute.xlu0 %31   ;;  %v38_v17 = vpop.permute.xlu1 %37  }
  0x7d   :  { %34 = vst.msk [vmem:[#allocation0] sm:$0x1] %vm33_vm5, %v32_v16  }
  0x7e   :  { %40 = vst.msk [vmem:[#allocation0] sm:$0x1] %vm39_vm6, %v38_v17  }
  0x80   :  { %v44_v18 = vpop.permute.xlu0 %43   ;;  %v50_v19 = vpop.permute.xlu1 %49  }
  0x81   :  { %46 = vst.msk [vmem:[#allocation0] sm:$0x1] %vm45_vm7, %v44_v18  }
  0x82   :  { %52 = vst.msk [vmem:[#allocation0] sm:$0x1] %vm51_vm8, %v50_v19  }
  0x84   :  { %v56_v20 = vpop.permute.xlu0 %55   ;;  %v62_v21 = vpop.permute.xlu1 %61  }
  0x85   :  { %58 = vst.msk [vmem:[#allocation0] sm:$0x1] %vm57_vm9, %v56_v20  }
  0x86   :  { %64 = vst.msk [vmem:[#allocation0] sm:$0x1] %vm63_vm10, %v62_v21  }
  0x88   :  { %v68_v22 = vpop.permute.xlu0 %67  }
  0x89   :  { %70 = vst.msk [vmem:[#allocation0] sm:$0x1] %vm69_vm11, %v68_v22  }
  0x90   :  { %v74_v23 = vld [vmem:[#allocation0] sm:$0x1] }
  0x91   :  { %76 = vst [vmem:[%s160_s1] sm:$0x1] %v74_v23 }

// kernel: _device_forward.1
= control target key start
LH: loop header
LB: loop body
LE: loop exit
PB: predicated region body
PF: predicated region fallthrough
CT: control target
= control target key end

     0   :  { %s1880_s15 = smov 0   ;;  %s1882_s16 = smov 0   ;;  %s2096_s0 = inlined_call_operand.vmem [shape: f32[2,128,32], index: 0, kind: input, shape index: {}]   ;;  %s2097_s1 = inlined_call_operand.vmem [shape: f32[2,24,32], index: 1, kind: input, shape index: {}]   ;;  %s2098_s2 = inlined_call_operand.vmem [shape: f32[4,32,32], index: 2, kind: input, shape index: {}]   ;;  %s2099_s3 = inlined_call_operand.vmem [shape: f32[4,32], index: 3, kind: input, shape index: {}]   ;;  %s2100_s4 = inlined_call_operand.vmem [shape: f32[2,24,128], index: 4, kind: output, shape index: {}]  }
   0x1   :  { %s1884_s17 = smov 0  }
   0x2 LB: > { %s26_s18 = sadd.s32 1, %s1846_s16  ;;  %p1373_p0 = scmp.ge.s32.totalorder %s1850_s17, 1  ;;  %s1850_s17 = sphi %s1884_s17, %s14_s17   ;;  %s1846_s16 = sphi %s1882_s16, %s2104_s16   ;;  %s1842_s15 = sphi %s1880_s15, %s2103_s15  }
   0x3   : > { %p28_p1 = scmp.ge.s32.totalorder %s26_s18, 2  ;;  %p193_p2 = scmp.lt.s32.totalorder %s1850_s17, 3 }
   0x5   : > { %s2106_s18 = smov (%p28_p1, %s26_s18), 0  ;;  %p194_p3 = pnand %p1373_p0, %p193_p2 }
   0x6   : > { %v273_v0 = vld [vmem:[%s2098_s2] sm:$0xff] (!%p194_p3)  ;;  %v274_v1 = vld [vmem:[%s2098_s2 + $0x8] sm:$0xff] (!%p194_p3)  ;;  %v275_v2 = vld [vmem:[%s2098_s2 + $0x10] sm:$0xff] (!%p194_p3)  ;;  %p232_p4 = scmp.lt.s32.totalorder (!%p194_p3), %s1842_s15, 1  ;;  %vm294_vm0 = vcmask (!%p194_p3), 261120   ;;  %v290_v31 = vlaneseq (!%p194_p3)  ;;  %vm1853_vm1 = vmmov (!%p194_p3), 0  }
   0x7   : > { %197 = sbr.rel (%p194_p3) target bundleno = 1174 (0x496), region = 36  ;;  %v1732_v3 = vpack.c.bf16 (!%p194_p3), %v274_v1, %v273_v0  ;;  %v276_v4 = vld [vmem:[%s2098_s2 + $0x18] sm:$0xff] (!%p194_p3)  ;;  %v277_v6 = vld [vmem:[%s2098_s2 + $0x20] sm:$0xff] (!%p194_p3)  ;;  %v278_v7 = vld [vmem:[%s2098_s2 + $0x28] sm:$0xff] (!%p194_p3) }
   0x8   : > { %v1736_v5 = vpack.c.bf16 (!%p194_p3), %v276_v4, %v275_v2  ;;  %v1740_v8 = vpack.c.bf16 (!%p194_p3), %v278_v7, %v277_v6  ;;  %v279_v11 = vld [vmem:[%s2098_s2 + $0x30] sm:$0xff] (!%p194_p3)  ;;  %v280_v12 = vld [vmem:[%s2098_s2 + $0x38] sm:$0xff] (!%p194_p3)  ;;  %v281_v28 = vld [vmem:[%s2098_s2 + $0x40] sm:$0xff] (!%p194_p3)  ;;  %v1968_v32 = vshrl.u32 (!%p194_p3), %v290_v31, 7 }
   0x9   : > { %1733 = vmatprep.subr.bf16.mxu0 (!%p194_p3), %v1732_v3  ;;  %1796 = vmatprep.subr.bf16.mxu1 (!%p194_p3), %v1732_v3  ;;  %v1744_v17 = vpack.c.bf16 (!%p194_p3), %v280_v12, %v279_v11  ;;  %v282_v29 = vld [vmem:[%s2098_s2 + $0x48] sm:$0xff] (!%p194_p3)  ;;  %v1974_v34 = vld [vmem:[%s2099_s3] sm:$0xf] (!%p194_p3)  ;;  %vm2053_vm2 = vmpackc.low (!%p194_p3), %vm294_vm0, %vm294_vm0 }
   0xa   : > { %1735 = vmatpush3.bf16.msra.mxu0 (!%p194_p3), %v1732_v3  ;;  %1798 = vmatpush3.bf16.msra.mxu1 (!%p194_p3), %v1732_v3  ;;  %v1748_v30 = vpack.c.bf16 (!%p194_p3), %v282_v29, %v281_v28  ;;  %v292_v33 = vsub.s32 (!%p194_p3), 0, %v1968_v32  ;;  %v506_v29 = vsub.s32 (!%p194_p3), 1, %v1968_v32 }
   0xb   : > { %1737 = vmatprep.subr.bf16.mxu0 (!%p194_p3), %v1736_v5  ;;  %1797 = vmatprep.subr.bf16.mxu1 (!%p194_p3), %v1736_v5 }
   0xc   : > { %v293_v35 = vrot.slane (!%p194_p3), %v1974_v34, %v292_v33 }
   0xe   : > { %s2108_s15 = smov (!%p232_p4, %s1842_s15), 1  ;;  %1739 = vmatpush3.bf16.msra.mxu0 %v1736_v5  ;;  %1799 = vmatpush3.bf16.msra.mxu1 %v1736_v5 }
   0xf   : > { %s1463_s5 = sshll.u32 %s2108_s15, 7  ;;  %1741 = vmatprep.subr.bf16.mxu1 %v1740_v8  ;;  %1749 = vmatprep.subr.bf16.mxu0 %v1748_v30  ;;  %s1800_s9 = smul.u32 24, %s2108_s15 }
  0x10   : > { %s1922_s8 = scalar_lea.vmem %s2096_s0, %s1463_s5 }
  0x11   : > { %v257_v9 = vld [vmem:[%s1922_s8] sm:$0xff]  ;;  %v258_v13 = vld [vmem:[%s1922_s8 + $0x8] sm:$0xff]  ;;  %v259_v15 = vld [vmem:[%s1922_s8 + $0x10] sm:$0xff]  ;;  %s245_s12 = scalar_lea.vmem %s2097_s1, %s1800_s9  ;;  %s255_s14 = scalar_lea.vmem %s2100_s4, %s1800_s9 }
  0x12   : > { %1571 = vmatprep.mubr.msk.f32.mxu0 %vm294_vm0, %v257_v9  ;;  %v261_v10 = vld [vmem:[%s1922_s8 + $0x20] sm:$0xff]  ;;  %v262_v14 = vld [vmem:[%s1922_s8 + $0x28] sm:$0xff]  ;;  %v263_v16 = vld [vmem:[%s1922_s8 + $0x30] sm:$0xff] }
  0x13   : > { %1577 = vmatprep.mubr.msk.f32.mxu1 %vm294_vm0, %v261_v10  ;;  %1572 = vmatmul.mubr.msk.f32.vlgmr.msra.gmra.mrb[0].mxu0 %vm294_vm0, %v258_v13  ;;  %v260_v18 = vld [vmem:[%s1922_s8 + $0x18] sm:$0xff]  ;;  %v265_v20 = vld [vmem:[%s1922_s8 + $0x40] sm:$0xff]  ;;  %v266_v21 = vld [vmem:[%s1922_s8 + $0x48] sm:$0xff] }
  0x14   : > { %1578 = vmatmul.mubr.msk.f32.vlgmr.msra.gmra.mrb[0].mxu1 %vm294_vm0, %v262_v14  ;;  %1574 = vmatprep.mubr.msk.f32.mxu0 %vm294_vm0, %v259_v15  ;;  %v264_v19 = vld [vmem:[%s1922_s8 + $0x38] sm:$0xff]  ;;  %v267_v22 = vld [vmem:[%s1922_s8 + $0x50] sm:$0xff]  ;;  %v269_v24 = vld [vmem:[%s1922_s8 + $0x60] sm:$0xff] }
  0x15   : > { %1580 = vmatprep.mubr.msk.f32.mxu1 %vm294_vm0, %v263_v16  ;;  %1743 = vmatpush3.bf16.msra.mxu1 %v1740_v8  ;;  %v268_v23 = vld [vmem:[%s1922_s8 + $0x58] sm:$0xff]  ;;  %v270_v25 = vld [vmem:[%s1922_s8 + $0x68] sm:$0xff]  ;;  %v271_v26 = vld [vmem:[%s1922_s8 + $0x70] sm:$0xff] }
  0x16   : > { %1745 = vmatprep.subr.bf16.mxu1 %v1744_v17  ;;  %v272_v27 = vld [vmem:[%s1922_s8 + $0x78] sm:$0xff]  ;;  %1751 = vmatpush3.bf16.msra.mxu0 %v1748_v30  ;;  %v507_v30 = vrot.slane %v1974_v34, %v506_v29 }
  0x17   : > { %1575 = vmatmul.mubr.msk.f32.gmra.mrb[2].mxu0 %vm294_vm0, %v260_v18 }
  0x18   : > { %1581 = vmatmul.mubr.msk.f32.gmra.mrb[2].mxu1 %vm294_vm0, %v264_v19 }
  0x19   : > { %1583 = vmatprep.mubr.msk.f32.mxu1 %vm294_vm0, %v265_v20  ;;  %1747 = vmatpush3.bf16.msra.mxu1 %v1744_v17  ;;  %v283_v20 = vld [vmem:[%s2098_s2 + $0x50] sm:$0xff] }
  0x1c   : > { %1584 = vmatmul.mubr.msk.f32.gmra.mrb[4].mxu1 %vm294_vm0, %v266_v21  ;;  %v284_v21 = vld [vmem:[%s2098_s2 + $0x58] sm:$0xff] }
  0x1d   : > { %1586 = vmatprep.mubr.msk.f32.mxu1 %vm294_vm0, %v267_v22  ;;  %v1752_v22 = vpack.c.bf16 %v284_v21, %v283_v20 }
  0x1f   : > { %1753 = vmatprep.subr.bf16.mxu0 %v1752_v22 }
  0x20   : > { %1587 = vmatmul.mubr.msk.f32.gmra.mrb[6].mxu1 %vm294_vm0, %v268_v23  ;;  %1755 = vmatpush3.bf16.msra.mxu0 %v1752_v22  ;;  %v285_v23 = vld [vmem:[%s2098_s2 + $0x60] sm:$0xff] }
  0x21   : > { %1589 = vmatprep.mubr.msk.f32.mxu1 %vm294_vm0, %v269_v24  ;;  %v286_v24 = vld [vmem:[%s2098_s2 + $0x68] sm:$0xff] }
  0x24   : > { %1590 = vmatmul.mubr.msk.f32.gmra.mrb[8].mxu1 %vm294_vm0, %v270_v25  ;;  %v287_v25 = vld [vmem:[%s2098_s2 + $0x70] sm:$0xff] }
  0x25   : > { %1592 = vmatprep.mubr.msk.f32.mxu1 %vm294_vm0, %v271_v26  ;;  %v1756_v26 = vpack.c.bf16 %v286_v24, %v285_v23 }
  0x27   : > { %1757 = vmatprep.subr.bf16.mxu1 %v1756_v26 }
  0x28   : > { %1593 = vmatmul.mubr.msk.f32.gmra.mrb[10].mxu1 %vm294_vm0, %v272_v27  ;;  %v288_v27 = vld [vmem:[%s2098_s2 + $0x78] sm:$0xff] }
  0x29   : > { %v1760_v28 = vpack.c.bf16 %v288_v27, %v287_v25 }
  0xe6   : > { %v1573_v36 = vpop.f32.mrb[0].mxu0 }
  0xe7   : > { %v1579_v37 = vpop.f32.mrb[0].mxu1  ;;  %v415_v38 = vadd.f32 %v1573_v36, %v293_v35  ;;  %v409_v39 = vpop.f32.mrb[1].mxu0 }
  0xe8   : > { %v429_v40 = vpop.f32.mrb[1].mxu1  ;;  %v410_v41 = vadd.f32 %v409_v39, %v293_v35  ;;  %v435_v52 = vadd.f32 %v1579_v37, %v293_v35 }
  0xe9   : > { %v430_v44 = vadd.f32 %v429_v40, %v293_v35  ;;  %v489_v46 = vmax.f32 %v415_v38, 0.0 }
  0xea   : > { %v488_v42 = vmax.f32 %v410_v41, 0.0  ;;  %v1576_v43 = vpop.f32.mrb[2].mxu0  ;;  %v493_v58 = vmax.f32 %v435_v52, 0.0 }
  0xeb   : > { %v1582_v45 = vpop.f32.mrb[2].mxu1  ;;  %v425_v47 = vadd.f32 %v1576_v43, %v293_v35  ;;  %v419_v48 = vpop.f32.mrb[3].mxu0  ;;  %v492_v54 = vmax.f32 %v430_v44, 0.0 }
  0xec   : > { %v439_v49 = vpop.f32.mrb[3].mxu1  ;;  %v420_v50 = vadd.f32 %v419_v48, %v293_v35  ;;  %1603 = vmatprep.mubr.msk.f32.mxu1 %vm294_vm0, %v488_v42  ;;  %v445_v59 = vadd.f32 %v1582_v45, %v293_v35 }
  0xed   : > { %v491_v51 = vmax.f32 %v425_v47, 0.0  ;;  %1604 = vmatmul.mubr.msk.f32.vlgmr.msra.gmra.mrb[12].mxu1 %vm294_vm0, %v489_v46  ;;  %v440_v55 = vadd.f32 %v439_v49, %v293_v35 }
  0xee   : > { %v490_v53 = vmax.f32 %v420_v50, 0.0  ;;  %v495_v0 = vmax.f32 %v445_v59, 0.0  ;;  %1759 = vmatpush3.bf16.msra.mxu1 %v1756_v26 }
  0xef   : > { %v1585_v56 = vpop.f32.mrb[4].mxu1  ;;  %v494_v60 = vmax.f32 %v440_v55, 0.0  ;;  %1761 = vmatprep.subr.bf16.mxu1 %v1760_v28 }
  0xf0   : > { %v449_v57 = vpop.f32.mrb[5].mxu1  ;;  %1606 = vmatprep.mubr.msk.f32.mxu1 %vm294_vm0, %v490_v53  ;;  %v455_v1 = vadd.f32 %v1585_v56, %v293_v35 }
  0xf1   : > { %1607 = vmatmul.mubr.msk.f32.gmra.mrb[14].mxu1 %vm294_vm0, %v491_v51  ;;  %v450_v61 = vadd.f32 %v449_v57, %v293_v35 }
  0xf2   : > { %1609 = vmatprep.mubr.msk.f32.mxu1 %vm294_vm0, %v492_v54  ;;  %v497_v6 = vmax.f32 %v455_v1, 0.0  ;;  %1763 = vmatpush3.bf16.msra.mxu1 %v1760_v28 }
  0xf3   : > { %v1588_v62 = vpop.f32.mrb[6].mxu1  ;;  %v496_v2 = vmax.f32 %v450_v61, 0.0 }
  0xf4   : > { %v459_v63 = vpop.f32.mrb[7].mxu1  ;;  %v465_v7 = vadd.f32 %v1588_v62, %v293_v35 }
  0xf5   : > { %1610 = vmatmul.mubr.msk.f32.gmra.mrb[16].mxu1 %vm294_vm0, %v493_v58  ;;  %v460_v3 = vadd.f32 %v459_v63, %v293_v35 }
  0xf6   : > { %1612 = vmatprep.mubr.msk.f32.mxu1 %vm294_vm0, %v494_v60  ;;  %v499_v12 = vmax.f32 %v465_v7, 0.0 }
  0xf7   : > { %v1591_v4 = vpop.f32.mrb[8].mxu1  ;;  %v498_v8 = vmax.f32 %v460_v3, 0.0 }
  0xf8   : > { %v469_v5 = vpop.f32.mrb[9].mxu1  ;;  %v475_v13 = vadd.f32 %v1591_v4, %v293_v35 }
  0xf9   : > { %1613 = vmatmul.mubr.msk.f32.gmra.mrb[18].mxu1 %vm294_vm0, %v495_v0  ;;  %v470_v9 = vadd.f32 %v469_v5, %v293_v35 }
  0xfa   : > { %1615 = vmatprep.mubr.msk.f32.mxu1 %vm294_vm0, %v496_v2  ;;  %v501_v16 = vmax.f32 %v475_v13, 0.0 }
  0xfb   : > { %v1594_v10 = vpop.f32.mrb[10].mxu1  ;;  %v500_v14 = vmax.f32 %v470_v9, 0.0 }
  0xfc   : > { %v479_v11 = vpop.f32.mrb[11].mxu1  ;;  %v485_v17 = vadd.f32 %v1594_v10, %v293_v35 }
  0xfd   : > { %1616 = vmatmul.mubr.msk.f32.gmra.mrb[20].mxu1 %vm294_vm0, %v497_v6  ;;  %v480_v15 = vadd.f32 %v479_v11, %v293_v35 }
  0xfe   : > { %1618 = vmatprep.mubr.msk.f32.mxu1 %vm294_vm0, %v498_v8  ;;  %v503_v19 = vmax.f32 %v485_v17, 0.0  ;;  %v719_v17 = vsub.s32 2, %v1968_v32 }
  0xff   : > { %v502_v18 = vmax.f32 %v480_v15, 0.0 }
 0x101   : > { %1619 = vmatmul.mubr.msk.f32.gmra.mrb[22].mxu1 %vm294_vm0, %v499_v12 }
 0x102   : > { %1621 = vmatprep.mubr.msk.f32.mxu1 %vm294_vm0, %v500_v14 }
 0x105   : > { %1622 = vmatmul.mubr.msk.f32.gmra.mrb[24].mxu1 %vm294_vm0, %v501_v16 }
 0x106   : > { %1624 = vmatprep.mubr.msk.f32.mxu1 %vm294_vm0, %v502_v18  ;;  %v720_v18 = vrot.slane %v1974_v34, %v719_v17 }
 0x109   : > { %1625 = vmatmul.mubr.msk.f32.gmra.mrb[26].mxu1 %vm294_vm0, %v503_v19 }
 0x1c0   : > { %v1605_v31 = vpop.f32.mrb[12].mxu1 }
 0x1c1   : > { %v628_v33 = vadd.f32 %v1605_v31, %v507_v30  ;;  %v622_v35 = vpop.f32.mrb[13].mxu1 }
 0x1c2   : > { %v623_v36 = vadd.f32 %v622_v35, %v507_v30 }
 0x1c3   : > { %v702_v39 = vmax.f32 %v628_v33, 0.0 }
 0x1c4   : > { %v701_v37 = vmax.f32 %v623_v36, 0.0  ;;  %v1608_v38 = vpop.f32.mrb[14].mxu1 }
 0x1c5   : > { %v638_v40 = vadd.f32 %v1608_v38, %v507_v30  ;;  %v632_v41 = vpop.f32.mrb[15].mxu1 }
 0x1c6   : > { %v633_v42 = vadd.f32 %v632_v41, %v507_v30  ;;  %1635 = vmatprep.mubr.msk.f32.mxu0 %vm294_vm0, %v701_v37 }
 0x1c7   : > { %v704_v43 = vmax.f32 %v638_v40, 0.0  ;;  %1636 = vmatmul.mubr.msk.f32.vlgmr.msra.gmra.mrb[4].mxu0 %vm294_vm0, %v702_v39 }
 0x1c8   : > { %v703_v44 = vmax.f32 %v633_v42, 0.0  ;;  %v1611_v45 = vpop.f32.mrb[16].mxu1 }
 0x1c9   : > { %v648_v46 = vadd.f32 %v1611_v45, %v507_v30  ;;  %v642_v47 = vpop.f32.mrb[17].mxu1 }
 0x1ca   : > { %v643_v48 = vadd.f32 %v642_v47, %v507_v30  ;;  %1638 = vmatprep.mubr.msk.f32.mxu0 %vm294_vm0, %v703_v44 }
 0x1cb   : > { %v706_v49 = vmax.f32 %v648_v46, 0.0  ;;  %1639 = vmatmul.mubr.msk.f32.gmra.mrb[6].mxu0 %vm294_vm0, %v704_v43 }
 0x1cc   : > { %v705_v50 = vmax.f32 %v643_v48, 0.0  ;;  %v1614_v51 = vpop.f32.mrb[18].mxu1 }
 0x1cd   : > { %v658_v52 = vadd.f32 %v1614_v51, %v507_v30  ;;  %v652_v53 = vpop.f32.mrb[19].mxu1 }
 0x1ce   : > { %1641 = vmatprep.mubr.msk.f32.mxu0 %vm294_vm0, %v705_v50  ;;  %v653_v54 = vadd.f32 %v652_v53, %v507_v30 }
 0x1cf   : > { %1642 = vmatmul.mubr.msk.f32.gmra.mrb[8].mxu0 %vm294_vm0, %v706_v49  ;;  %v708_v55 = vmax.f32 %v658_v52, 0.0 }
 0x1d0   : > { %v707_v56 = vmax.f32 %v653_v54, 0.0  ;;  %v1617_v57 = vpop.f32.mrb[20].mxu1 }
 0x1d1   : > { %v668_v58 = vadd.f32 %v1617_v57, %v507_v30  ;;  %v662_v59 = vpop.f32.mrb[21].mxu1 }
 0x1d2   : > { %1644 = vmatprep.mubr.msk.f32.mxu0 %vm294_vm0, %v707_v56  ;;  %v663_v60 = vadd.f32 %v662_v59, %v507_v30 }
 0x1d3   : > { %1645 = vmatmul.mubr.msk.f32.gmra.mrb[10].mxu0 %vm294_vm0, %v708_v55  ;;  %v710_v61 = vmax.f32 %v668_v58, 0.0 }
 0x1d4   : > { %v709_v62 = vmax.f32 %v663_v60, 0.0  ;;  %v1620_v63 = vpop.f32.mrb[22].mxu1 }
 0x1d5   : > { %v678_v0 = vadd.f32 %v1620_v63, %v507_v30  ;;  %v672_v1 = vpop.f32.mrb[23].mxu1 }
 0x1d6   : > { %1647 = vmatprep.mubr.msk.f32.mxu0 %vm294_vm0, %v709_v62  ;;  %v673_v2 = vadd.f32 %v672_v1, %v507_v30 }
 0x1d7   : > { %1648 = vmatmul.mubr.msk.f32.gmra.mrb[12].mxu0 %vm294_vm0, %v710_v61  ;;  %v712_v3 = vmax.f32 %v678_v0, 0.0 }
 0x1d8   : > { %v711_v4 = vmax.f32 %v673_v2, 0.0  ;;  %v1623_v5 = vpop.f32.mrb[24].mxu1 }
 0x1d9   : > { %v688_v6 = vadd.f32 %v1623_v5, %v507_v30  ;;  %v682_v7 = vpop.f32.mrb[25].mxu1  ;;  %v1852_v5 = vmov 0.0|0.0  }
 0x1da   : > { %1650 = vmatprep.mubr.msk.f32.mxu0 %vm294_vm0, %v711_v4  ;;  %v683_v8 = vadd.f32 %v682_v7, %v507_v30  ;;  %1764 = vmatprep.subr.bf16.mxu0 %v1852_v5  ;;  %v932_v7 = vsub.s32 3, %v1968_v32 }
 0x1db   : > { %1651 = vmatmul.mubr.msk.f32.gmra.mrb[14].mxu0 %vm294_vm0, %v712_v3  ;;  %v714_v9 = vmax.f32 %v688_v6, 0.0  ;;  %v1854_v6 = vmov 0.0  }
 0x1dc   : > { %v713_v10 = vmax.f32 %v683_v8, 0.0  ;;  %v1626_v11 = vpop.f32.mrb[26].mxu1  ;;  %v933_v8 = vrot.slane %v1974_v34, %v932_v7 }
 0x1dd   : > { %v698_v12 = vadd.f32 %v1626_v11, %v507_v30  ;;  %v692_v13 = vpop.f32.mrb[27].mxu1 }
 0x1de   : > { %1653 = vmatprep.mubr.msk.f32.mxu0 %vm294_vm0, %v713_v10  ;;  %v693_v14 = vadd.f32 %v692_v13, %v507_v30 }
 0x1df   : > { %1654 = vmatmul.mubr.msk.f32.gmra.mrb[16].mxu0 %vm294_vm0, %v714_v9  ;;  %v716_v15 = vmax.f32 %v698_v12, 0.0 }
 0x1e0   : > { %v715_v16 = vmax.f32 %v693_v14, 0.0 }
 0x1e2   : > { %1656 = vmatprep.mubr.msk.f32.mxu0 %vm294_vm0, %v715_v16 }
 0x1e3   : > { %1657 = vmatmul.mubr.msk.f32.gmra.mrb[18].mxu0 %vm294_vm0, %v716_v15 }
 0x1e4   : > { %1723 = vmatprep.mubr.msk.f32.mxu0 %vm1853_vm1, %v1854_v6 }
 0x29a   : > { %v1637_v19 = vpop.f32.mrb[4].mxu0 }
 0x29b   : > { %v841_v20 = vadd.f32 %v1637_v19, %v720_v18  ;;  %v835_v21 = vpop.f32.mrb[5].mxu0 }
 0x29c   : > { %v836_v22 = vadd.f32 %v835_v21, %v720_v18 }
 0x29d   : > { %v915_v25 = vmax.f32 %v841_v20, 0.0 }
 0x29e   : > { %v914_v23 = vmax.f32 %v836_v22, 0.0  ;;  %v1640_v24 = vpop.f32.mrb[6].mxu0 }
 0x29f   : > { %v851_v26 = vadd.f32 %v1640_v24, %v720_v18  ;;  %v845_v27 = vpop.f32.mrb[7].mxu0 }
 0x2a0   : > { %v846_v28 = vadd.f32 %v845_v27, %v720_v18  ;;  %1667 = vmatprep.mubr.msk.f32.mxu1 %vm294_vm0, %v914_v23 }
 0x2a1   : > { %1668 = vmatmul.mubr.msk.f32.vlgmr.msra.gmra.mrb[28].mxu1 %vm294_vm0, %v915_v25  ;;  %v917_v31 = vmax.f32 %v851_v26, 0.0 }
 0x2a2   : > { %v916_v29 = vmax.f32 %v846_v28, 0.0  ;;  %v1643_v30 = vpop.f32.mrb[8].mxu0 }
 0x2a3   : > { %v861_v33 = vadd.f32 %v1643_v30, %v720_v18  ;;  %v855_v35 = vpop.f32.mrb[9].mxu0 }
 0x2a4   : > { %v856_v36 = vadd.f32 %v855_v35, %v720_v18  ;;  %1670 = vmatprep.mubr.msk.f32.mxu1 %vm294_vm0, %v916_v29 }
 0x2a5   : > { %v919_v37 = vmax.f32 %v861_v33, 0.0  ;;  %1671 = vmatmul.mubr.msk.f32.gmra.mrb[30].mxu1 %vm294_vm0, %v917_v31 }
 0x2a6   : > { %v918_v38 = vmax.f32 %v856_v36, 0.0  ;;  %v1646_v39 = vpop.f32.mrb[10].mxu0 }
 0x2a7   : > { %v871_v40 = vadd.f32 %v1646_v39, %v720_v18  ;;  %v865_v41 = vpop.f32.mrb[11].mxu0 }
 0x2a8   : > { %1673 = vmatprep.mubr.msk.f32.mxu1 %vm294_vm0, %v918_v38  ;;  %v866_v42 = vadd.f32 %v865_v41, %v720_v18 }
 0x2a9   : > { %1674 = vmatmul.mubr.msk.f32.gmra.mrb[32].mxu1 %vm294_vm0, %v919_v37  ;;  %v921_v43 = vmax.f32 %v871_v40, 0.0 }
 0x2aa   : > { %v920_v44 = vmax.f32 %v866_v42, 0.0  ;;  %v1649_v45 = vpop.f32.mrb[12].mxu0 }
 0x2ab   : > { %v881_v46 = vadd.f32 %v1649_v45, %v720_v18  ;;  %v875_v47 = vpop.f32.mrb[13].mxu0 }
 0x2ac   : > { %1676 = vmatprep.mubr.msk.f32.mxu1 %vm294_vm0, %v920_v44  ;;  %v876_v48 = vadd.f32 %v875_v47, %v720_v18 }
 0x2ad   : > { %1677 = vmatmul.mubr.msk.f32.gmra.mrb[34].mxu1 %vm294_vm0, %v921_v43  ;;  %v923_v49 = vmax.f32 %v881_v46, 0.0 }
 0x2ae   : > { %v922_v50 = vmax.f32 %v876_v48, 0.0  ;;  %v1652_v51 = vpop.f32.mrb[14].mxu0 }
 0x2af   : > { %v891_v52 = vadd.f32 %v1652_v51, %v720_v18  ;;  %v885_v53 = vpop.f32.mrb[15].mxu0  ;;  %v1128_v51 = vld [vmem:[%s245_s12 + $0x8] sm:$0xff] }
 0x2b0   : > { %1679 = vmatprep.mubr.msk.f32.mxu1 %vm294_vm0, %v922_v50  ;;  %v886_v54 = vadd.f32 %v885_v53, %v720_v18  ;;  %v1127_v50 = vld [vmem:[%s245_s12] sm:$0xff] }
 0x2b1   : > { %1680 = vmatmul.mubr.msk.f32.gmra.mrb[36].mxu1 %vm294_vm0, %v923_v49  ;;  %v925_v55 = vmax.f32 %v891_v52, 0.0  ;;  %v1129_v52 = vld [vmem:[%s245_s12 + $0x10] sm:$0xff] }
 0x2b2   : > { %v924_v56 = vmax.f32 %v886_v54, 0.0  ;;  %v1655_v57 = vpop.f32.mrb[16].mxu0 }
 0x2b3   : > { %v901_v58 = vadd.f32 %v1655_v57, %v720_v18  ;;  %v895_v59 = vpop.f32.mrb[17].mxu0 }
 0x2b4   : > { %1682 = vmatprep.mubr.msk.f32.mxu1 %vm294_vm0, %v924_v56  ;;  %v896_v60 = vadd.f32 %v895_v59, %v720_v18 }
 0x2b5   : > { %1683 = vmatmul.mubr.msk.f32.gmra.mrb[38].mxu1 %vm294_vm0, %v925_v55  ;;  %v927_v61 = vmax.f32 %v901_v58, 0.0 }
 0x2b6   : > { %v926_v62 = vmax.f32 %v896_v60, 0.0  ;;  %v1658_v63 = vpop.f32.mrb[18].mxu0 }
 0x2b7   : > { %v911_v0 = vadd.f32 %v1658_v63, %v720_v18  ;;  %v905_v1 = vpop.f32.mrb[19].mxu0 }
 0x2b8   : > { %1685 = vmatprep.mubr.msk.f32.mxu1 %vm294_vm0, %v926_v62  ;;  %v906_v2 = vadd.f32 %v905_v1, %v720_v18 }
 0x2b9   : > { %1686 = vmatmul.mubr.msk.f32.gmra.mrb[40].mxu1 %vm294_vm0, %v927_v61  ;;  %v929_v3 = vmax.f32 %v911_v0, 0.0 }
 0x2ba   : > { %v928_v4 = vmax.f32 %v906_v2, 0.0 }
 0x2bc   : > { %1688 = vmatprep.mubr.msk.f32.mxu1 %vm294_vm0, %v928_v4 }
 0x2bd   : > { %1689 = vmatmul.mubr.msk.f32.gmra.mrb[42].mxu1 %vm294_vm0, %v929_v3 }
 0x374   : > { %v1669_v9 = vpop.f32.mrb[28].mxu1 }
 0x375   : > { %v1054_v10 = vadd.f32 %v1669_v9, %v933_v8  ;;  %v1048_v11 = vpop.f32.mrb[29].mxu1 }
 0x376   : > { %v1049_v12 = vadd.f32 %v1048_v11, %v933_v8 }
 0x378   : > { %v1765_v14 = vpack.c.bf16 %v1054_v10, %v1049_v12  ;;  %v1672_v15 = vpop.f32.mrb[30].mxu1 }
 0x379   : > { %v1064_v16 = vadd.f32 %v1672_v15, %v933_v8  ;;  %v1058_v17 = vpop.f32.mrb[31].mxu1 }
 0x37a   : > { %v1059_v18 = vadd.f32 %v1058_v17, %v933_v8  ;;  %1767 = vmatpush3.bf16.xpose.msk.msra.mxu0 %vm2053_vm2, %v1765_v14 }
 0x37b   : > { %1768 = vmatprep.subr.bf16.mxu0 %v1852_v5 }
 0x37c   : > { %v1769_v32 = vpack.c.bf16 %v1064_v16, %v1059_v18  ;;  %v1675_v34 = vpop.f32.mrb[32].mxu1 }
 0x37d   : > { %v1074_v19 = vadd.f32 %v1675_v34, %v933_v8  ;;  %v1068_v20 = vpop.f32.mrb[33].mxu1 }
 0x37e   : > { %v1069_v21 = vadd.f32 %v1068_v20, %v933_v8 }
 0x380   : > { %v1773_v22 = vpack.c.bf16 %v1074_v19, %v1069_v21  ;;  %v1678_v23 = vpop.f32.mrb[34].mxu1 }
 0x381   : > { %v1084_v24 = vadd.f32 %v1678_v23, %v933_v8  ;;  %v1078_v25 = vpop.f32.mrb[35].mxu1 }
 0x382   : > { %1771 = vmatpush3.bf16.xpose.msk.msra.mxu0 %vm2053_vm2, %v1769_v32  ;;  %v1079_v26 = vadd.f32 %v1078_v25, %v933_v8 }
 0x383   : > { %1772 = vmatprep.subr.bf16.mxu0 %v1852_v5 }
 0x384   : > { %v1777_v27 = vpack.c.bf16 %v1084_v24, %v1079_v26  ;;  %v1681_v28 = vpop.f32.mrb[36].mxu1 }
 0x385   : > { %v1094_v29 = vadd.f32 %v1681_v28, %v933_v8  ;;  %v1088_v30 = vpop.f32.mrb[37].mxu1 }
 0x386   : > { %v1089_v31 = vadd.f32 %v1088_v30, %v933_v8 }
 0x388   : > { %v1781_v33 = vpack.c.bf16 %v1094_v29, %v1089_v31  ;;  %v1684_v35 = vpop.f32.mrb[38].mxu1 }
 0x389   : > { %v1104_v36 = vadd.f32 %v1684_v35, %v933_v8  ;;  %v1098_v37 = vpop.f32.mrb[39].mxu1 }
 0x38a   : > { %1775 = vmatpush3.bf16.xpose.msk.msra.mxu0 %vm2053_vm2, %v1773_v22  ;;  %v1099_v38 = vadd.f32 %v1098_v37, %v933_v8 }
 0x38b   : > { %1776 = vmatprep.subr.bf16.mxu0 %v1852_v5 }
 0x38c   : > { %v1785_v39 = vpack.c.bf16 %v1104_v36, %v1099_v38  ;;  %v1687_v40 = vpop.f32.mrb[40].mxu1 }
 0x38d   : > { %v1114_v41 = vadd.f32 %v1687_v40, %v933_v8  ;;  %v1108_v42 = vpop.f32.mrb[41].mxu1 }
 0x38e   : > { %v1109_v43 = vadd.f32 %v1108_v42, %v933_v8 }
 0x390   : > { %v1789_v44 = vpack.c.bf16 %v1114_v41, %v1109_v43  ;;  %v1690_v45 = vpop.f32.mrb[42].mxu1 }
 0x391   : > { %v1124_v46 = vadd.f32 %v1690_v45, %v933_v8  ;;  %v1118_v47 = vpop.f32.mrb[43].mxu1 }
 0x392   : > { %1779 = vmatpush3.bf16.xpose.msk.msra.mxu0 %vm2053_vm2, %v1777_v27  ;;  %v1119_v48 = vadd.f32 %v1118_v47, %v933_v8 }
 0x393   : > { %1780 = vmatprep.subr.bf16.mxu0 %v1852_v5 }
 0x394   : > { %v1793_v49 = vpack.c.bf16 %v1124_v46, %v1119_v48 }
 0x39a   : > { %1783 = vmatpush3.bf16.xpose.msk.msra.mxu0 %vm2053_vm2, %v1781_v33 }
 0x39b   : > { %1784 = vmatprep.subr.bf16.mxu0 %v1852_v5 }
 0x3a2   : > { %1787 = vmatpush3.bf16.xpose.msk.msra.mxu0 %vm2053_vm2, %v1785_v39 }
 0x3a3   : > { %1788 = vmatprep.subr.bf16.mxu0 %v1852_v5 }
 0x3aa   : > { %1791 = vmatpush3.bf16.xpose.msk.msra.mxu0 %vm2053_vm2, %v1789_v44 }
 0x3ab   : > { %1792 = vmatprep.subr.bf16.mxu0 %v1852_v5 }
 0x3b2   : > { %1795 = vmatpush3.bf16.xpose.msk.msra.mxu0 %vm2053_vm2, %v1793_v49 }
 0x3b9   : > { %1724 = vmatmul.mubr.msk.f32.vlgmr.msra.gmra.mrb[20].mxu0 %vm294_vm0, %v1127_v50 }
 0x3ba   : > { %1726 = vmatprep.mubr.msk.f32.mxu0 %vm1853_vm1, %v1854_v6 }
 0x3bd   : > { %1727 = vmatmul.mubr.msk.f32.gmra.mrb[22].mxu0 %vm294_vm0, %v1128_v51 }
 0x3be   : > { %1729 = vmatprep.mubr.msk.f32.mxu0 %vm1853_vm1, %v1854_v6 }
 0x3c1   : > { %1730 = vmatmul.mubr.msk.f32.gmra.mrb[24].mxu0 %vm294_vm0, %v1129_v52 }
 0x48c   : > { %v1253_v53 = vpop.f32.mrb[20].mxu0 }
 0x48d   : > { %1267 = vst [vmem:[%s255_s14] sm:$0xff] %v1253_v53  ;;  %v1725_v54 = vpop.f32.mrb[21].mxu0 }
 0x490   : > { %v1258_v55 = vpop.f32.mrb[22].mxu0 }
 0x491   : > { %1268 = vst [vmem:[%s255_s14 + $0x8] sm:$0xff] %v1258_v55  ;;  %v1728_v56 = vpop.f32.mrb[23].mxu0 }
 0x494   : > { %v1263_v57 = vpop.f32.mrb[24].mxu0 }
 0x495   : > { %1269 = vst [vmem:[%s255_s14 + $0x10] sm:$0xff] %v1263_v57  ;;  %v1731_v58 = vpop.f32.mrb[25].mxu0 }
 0x496 PF: > { %s14_s17 = sadd.s32 1, %s1850_s17   ;;  %s2103_s15 = smov %s1846_s16 }
 0x497   : > { %p11_p5 = scmp.ge.s32.totalorder %s14_s17, 4   ;;  %s2104_s16 = smov %s2106_s18 }
 0x499   :  { %13 = sbr.rel (!%p11_p5) target bundleno = 2 (0x2), region = 69 }

</bundles_post_ra>
